<compile_context>
chip_gen: v7x
topology: tpu7x:2x2x1
jax: 0.10.0
libtpu: 0.0.40
codegen_flags: <defaults>
</compile_context>

<pallas_src>
import functools
import math

import jax
import jax.numpy as jnp
from jax import lax
from jax.experimental import pallas as pl
from jax.experimental.pallas import tpu as pltpu


def _attention_kernel(x_ref, wqkv_ref, o_ref, *, dim, seq, block_b,
                      compute_dtype, approx_recip):
    """One grid step = `block_b` batch elements.

    x_ref:    (block_b, S, D)
    wqkv_ref: (3*D, D)   fused [Wq; Wk; Wv] in torch (out_features, in_features) layout
    o_ref:    (block_b, S, D)
    """
    x = x_ref[...]
    w = wqkv_ref[...]

    # ---- fused QKV projection -------------------------------------------------
    # Flatten (block_b, S, D) -> (block_b*S, D) so one MXU matmul covers every row
    # in this block; contract the last dims of both operands so x @ W^T is computed
    # without materializing a transposed weight.
    xc = x.reshape(block_b * seq, dim).astype(compute_dtype)
    wc = w.astype(compute_dtype)
    qkv = lax.dot_general(
        xc, wc,
        dimension_numbers=(((1,), (1,)), ((), ())),
        preferred_element_type=jnp.float32,
    )                                                    # (block_b*S, 3*D) f32

    q = qkv[:, 0 * dim:1 * dim].reshape(block_b, seq, dim)
    k = qkv[:, 1 * dim:2 * dim].reshape(block_b, seq, dim)
    v = qkv[:, 2 * dim:3 * dim].reshape(block_b, seq, dim)

    # ---- attention scores: Q @ K^T / sqrt(D) ----------------------------------
    # Batched last-dim contraction (no in-kernel transpose of K).
    scale = 1.0 / math.sqrt(dim)
    s = lax.dot_general(
        q.astype(compute_dtype), k.astype(compute_dtype),
        dimension_numbers=(((2,), (2,)), ((0,), (0,))),
        preferred_element_type=jnp.float32,
    ) * scale                                            # (block_b, S, S) f32

    # ---- softmax over torch dim=1 (the *query* axis of each (S, S) matrix) -----
    # Softmax math stays in f32 regardless of the MXU compute dtype.
    # TODO(synk): for very large S, tile this reduction flash-style over the query
    # axis (running max/sum) to stay inside v7x's 64 MiB VMEM.
    m = jnp.max(s, axis=1, keepdims=True)
    e = jnp.exp(s - m)
    denom = jnp.sum(e, axis=1, keepdims=True)
    if approx_recip:
        a = e * pl.reciprocal(denom, approx=True)        # EUP slot -> ~free
    else:
        a = e / denom                                    # exact division (f32 path)

    # ---- out = A @ V ------------------------------------------------------------
    out = lax.dot_general(
        a.astype(compute_dtype), v.astype(compute_dtype),
        dimension_numbers=(((2,), (1,)), ((0,), (0,))),
        preferred_element_type=jnp.float32,
    )                                                    # (block_b, S, D) f32

    # TODO(synk): D < 128 makes this a masked partial-lane store; a lane-dense
    # packed output layout would need wrapper-side reshuffling of the output.
    o_ref[...] = out.astype(o_ref.dtype)


def _pick_block_b(batch, max_block=8):
    """Largest divisor of `batch` <= max_block (amortizes ~0.35us/grid-step overhead)."""
    for cand in range(min(batch, max_block), 0, -1):
        if batch % cand == 0:
            return cand
    return 1


def attention_pallas(x, wq, wk, wv, *, compute_dtype=jnp.float32, block_b=None):
    B, S, D = x.shape
    # Fuse the three projection weights once outside the kernel: (3*D, D).
    w_qkv = jnp.concatenate([wq, wk, wv], axis=0)

    if block_b is None:
        block_b = _pick_block_b(B)
    assert B % block_b == 0, "block_b must divide the batch size"
    grid = (B // block_b,)

    kernel = functools.partial(
        _attention_kernel,
        dim=D, seq=S, block_b=block_b,
        compute_dtype=compute_dtype,
        approx_recip=(compute_dtype != jnp.float32),
    )

    # TODO(synk): for very large D, add a K-tiling grid axis ("arbitrary") with an
    # f32 accumulator and set vmem_limit_bytes; unnecessary at these demo shapes.
    return pl.pallas_call(
        kernel,
        out_shape=jax.ShapeDtypeStruct((B, S, D), x.dtype),
        grid_spec=pltpu.PrefetchScalarGridSpec(
            num_scalar_prefetch=0,
            grid=grid,
            in_specs=[
                pl.BlockSpec((block_b, S, D), lambda b: (b, 0, 0)),   # x: block of batches
                pl.BlockSpec((3 * D, D), lambda b: (0, 0)),           # fused Wqkv (resident)
            ],
            out_specs=pl.BlockSpec((block_b, S, D), lambda b: (b, 0, 0)),
        ),
        compiler_params=pltpu.CompilerParams(
            # independent batch blocks -> shard across TensorCores on v7x megacore
            dimension_semantics=("parallel",),
        ),
    )(x, w_qkv)


def attention_reference(x, wq, wk, wv):
    # Pure-JAX reference mirroring the PyTorch module exactly.
    q = jnp.einsum("bsd,od->bso", x, wq)
    k = jnp.einsum("bsd,od->bso", x, wk)
    v = jnp.einsum("bsd,od->bso", x, wv)
    s = jnp.einsum("bid,bjd->bij", q, k) / math.sqrt(x.shape[-1])
    a = jax.nn.softmax(s, axis=1)          # torch Softmax(dim=1)
    return jnp.einsum("bij,bjd->bid", a, v)


if __name__ == "__main__":
    B, S, D = 2, 8, 32     # batch, sequence, hidden dim

    key = jax.random.PRNGKey(0)
    kx, kq, kk, kv = jax.random.split(key, 4)

    x = jax.random.normal(kx, (B, S, D), dtype=jnp.float32)
    # nn.Linear(dim, dim, bias=False) weights have shape (out_features, in_features)
    bound = 1.0 / math.sqrt(D)
    wq = jax.random.uniform(kq, (D, D), minval=-bound, maxval=bound, dtype=jnp.float32)
    wk = jax.random.uniform(kk, (D, D), minval=-bound, maxval=bound, dtype=jnp.float32)
    wv = jax.random.uniform(kv, (D, D), minval=-bound, maxval=bound, dtype=jnp.float32)

    ref = attention_reference(x, wq, wk, wv)

    # f32 MXU operands: matches the reference tightly.
    out_f32 = jax.block_until_ready(attention_pallas(x, wq, wk, wv))
    assert out_f32.shape == (B, S, D)
    assert jnp.allclose(out_f32, ref, atol=1e-4, rtol=1e-4), "f32 kernel mismatch vs reference"

    # bf16 MXU operands (v6e/v7x fast path): f32 accumulation, f32 softmax math;
    # looser tolerance accounts for bf16 operand rounding.
    out_bf16 = jax.block_until_ready(
        attention_pallas(x, wq, wk, wv, compute_dtype=jnp.bfloat16))
    assert out_bf16.shape == (B, S, D)
    assert jnp.allclose(out_bf16, ref, atol=5e-2, rtol=5e-2), "bf16 kernel mismatch vs reference"

    print("KERNEL_OK")
</pallas_src>

<mosaic_0001>
module attributes {stable_mosaic.version = 11 : i64} {
  func.func @_attention_kernel(%arg0: i32, %arg1: memref<2x8x32xf32, #tpu.memory_space<vmem>>, %arg2: memref<96x32xf32, #tpu.memory_space<vmem>>, %arg3: memref<2x8x32xf32, #tpu.memory_space<vmem>>) attributes {dimension_semantics = [#tpu.dimension_semantics<parallel>], iteration_bounds = array<i64: 1>, scalar_prefetch = 0 : i64, scratch_operands = 0 : i64, tpu.core_type = #tpu.core_type<tc>, window_params = [{transform_indices = @transform_0, window_bounds = array<i64: 2, 8, 32>}, {pipeline_mode = #tpu.pipeline_mode<synchronous>, transform_indices = @transform_1, window_bounds = array<i64: 96, 32>}, {transform_indices = @transform_2, window_bounds = array<i64: 2, 8, 32>}]} {
    %c0 = arith.constant 0 : index
    %c0_0 = arith.constant 0 : index
    %c0_1 = arith.constant 0 : index
    %0 = vector.load %arg1[%c0, %c0_0, %c0_1] : memref<2x8x32xf32, #tpu.memory_space<vmem>>, vector<2x8x32xf32>
    %c0_2 = arith.constant 0 : index
    %c0_3 = arith.constant 0 : index
    %1 = vector.load %arg2[%c0_2, %c0_3] : memref<96x32xf32, #tpu.memory_space<vmem>>, vector<96x32xf32>
    %2 = vector.shape_cast %0 : vector<2x8x32xf32> to vector<16x32xf32>
    %cst = arith.constant dense<0.000000e+00> : vector<16x96xf32>
    %3 = tpu.matmul %2, %1, %cst {dimension_numbers = #tpu.dot_dimension_numbers<[1], [1], [0], [0], [0, 0, 1, 0], [], []>} : vector<16x32xf32>, vector<96x32xf32>, vector<16x96xf32> -> vector<16x96xf32>
    %4 = vector.extract_strided_slice %3 {offsets = [0, 0], sizes = [16, 32], strides = [1, 1]} : vector<16x96xf32> to vector<16x32xf32>
    %5 = vector.shape_cast %4 : vector<16x32xf32> to vector<2x8x32xf32>
    %6 = vector.extract_strided_slice %3 {offsets = [0, 32], sizes = [16, 32], strides = [1, 1]} : vector<16x96xf32> to vector<16x32xf32>
    %7 = vector.shape_cast %6 : vector<16x32xf32> to vector<2x8x32xf32>
    %8 = vector.extract_strided_slice %3 {offsets = [0, 64], sizes = [16, 32], strides = [1, 1]} : vector<16x96xf32> to vector<16x32xf32>
    %9 = vector.shape_cast %8 : vector<16x32xf32> to vector<2x8x32xf32>
    %cst_4 = arith.constant dense<0.000000e+00> : vector<2x8x8xf32>
    %10 = tpu.matmul %5, %7, %cst_4 {dimension_numbers = #tpu.dot_dimension_numbers<[2], [2], [1], [1], [0, 0, 0, 1, 1, 1], [0], [0]>} : vector<2x8x32xf32>, vector<2x8x32xf32>, vector<2x8x8xf32> -> vector<2x8x8xf32>
    %cst_5 = arith.constant 0.176776692 : f32
    %11 = vector.broadcast %cst_5 : f32 to vector<2x8x8xf32>
    %12 = arith.mulf %10, %11 : vector<2x8x8xf32>
    %cst_6 = arith.constant dense<0xFF800000> : vector<2x8xf32>
    %13 = vector.multi_reduction <maximumf>, %12, %cst_6 [1] : vector<2x8x8xf32> to vector<2x8xf32>
    %14 = vector.shape_cast %13 : vector<2x8xf32> to vector<2x1x8xf32>
    %15 = vector.broadcast %14 : vector<2x1x8xf32> to vector<2x8x8xf32>
    %16 = arith.subf %12, %15 : vector<2x8x8xf32>
    %17 = math.exp %16 : vector<2x8x8xf32>
    %cst_7 = arith.constant dense<0.000000e+00> : vector<2x8xf32>
    %18 = vector.multi_reduction <add>, %17, %cst_7 [1] : vector<2x8x8xf32> to vector<2x8xf32>
    %19 = vector.shape_cast %18 : vector<2x8xf32> to vector<2x1x8xf32>
    %20 = vector.broadcast %19 : vector<2x1x8xf32> to vector<2x8x8xf32>
    %21 = arith.divf %17, %20 : vector<2x8x8xf32>
    %cst_8 = arith.constant dense<0.000000e+00> : vector<2x8x32xf32>
    %22 = tpu.matmul %21, %9, %cst_8 {dimension_numbers = #tpu.dot_dimension_numbers<[2], [1], [1], [2], [0, 0, 0, 1, 1, 2], [0], [0]>} : vector<2x8x8xf32>, vector<2x8x32xf32>, vector<2x8x32xf32> -> vector<2x8x32xf32>
    %c0_9 = arith.constant 0 : index
    %c0_10 = arith.constant 0 : index
    %c0_11 = arith.constant 0 : index
    %23 = vector.load %arg3[%c0_9, %c0_10, %c0_11] : memref<2x8x32xf32, #tpu.memory_space<vmem>>, vector<2x8x32xf32>
    tpu.vector_store %arg3[%c0_9, %c0_10, %c0_11], %22 {strides = array<i32>} : memref<2x8x32xf32, #tpu.memory_space<vmem>>, vector<2x8x32xf32>,
    return
  }
  func.func @transform_0(%arg0: i32) -> (i32, i32, i32) {
    %c0_i32 = arith.constant 0 : i32
    %c0_i32_0 = arith.constant 0 : i32
    %c0_i32_1 = arith.constant 0 : i32
    return %arg0, %c0_i32, %c0_i32_0 : i32, i32, i32
  }
  func.func @transform_1(%arg0: i32) -> (i32, i32) {
    %c0_i32 = arith.constant 0 : i32
    %c0_i32_0 = arith.constant 0 : i32
    %c0_i32_1 = arith.constant 0 : i32
    return %c0_i32, %c0_i32_0 : i32, i32
  }
  func.func @transform_2(%arg0: i32) -> (i32, i32, i32) {
    %c0_i32 = arith.constant 0 : i32
    %c0_i32_0 = arith.constant 0 : i32
    %c0_i32_1 = arith.constant 0 : i32
    return %arg0, %c0_i32, %c0_i32_0 : i32, i32, i32
  }
}

</mosaic_0001>

<bundles_post_ra>
// kernel: tpu_custom_call.1
= control target key start
LH: loop header
LB: loop body
LE: loop exit
PB: predicated region body
PF: predicated region fallthrough
CT: control target
= control target key end

     0   :  { %vm26_vm0 = vcmask 261120   ;;  %s805_s0 = inlined_call_operand.vmem [shape: f32[2,8,32], index: 0, kind: input, shape index: {}]   ;;  %s806_s1 = inlined_call_operand.vmem [shape: f32[96,32], index: 1, kind: input, shape index: {}]   ;;  %s807_s2 = inlined_call_operand.hbm [shape: f32[2,8,32], index: 2, kind: output, shape index: {}]  }
   0x1   :  { %v14_v0 = vld [vmem:[%s806_s1] sm:$0xff]  ;;  %v15_v1 = vld [vmem:[%s806_s1 + $0x8] sm:$0xff]  ;;  %v16_v2 = vld [vmem:[%s806_s1 + $0x10] sm:$0xff] }
   0x2   :  { %v598_v3 = vpack.c.bf16 %v15_v1, %v14_v0  ;;  %vm706_vm1 = vmpackc.low %vm26_vm0, %vm26_vm0  ;;  %v17_v5 = vld [vmem:[%s806_s1 + $0x18] sm:$0xff]  ;;  %v12_v7 = vld [vmem:[%s805_s0] sm:$0xff] }
   0x3   :  { %v604_v6 = vpack.c.bf16 %v17_v5, %v16_v2  ;;  %575 = vmatprep.mubr.msk.f32.mxu0 %vm26_vm0, %v12_v7 }
   0x4   :  { %600 = vmatprep.subr.msk.bf16.mxu0 %vm706_vm1, %v598_v3 }
   0x5   :  { %603 = vmatpush3.bf16.xpose.msk.msra.mxu0 %vm706_vm1, %v598_v3 }
   0x6   :  { %606 = vmatprep.subr.msk.bf16.mxu0 %vm706_vm1, %v604_v6 }
   0x7   :  { %7 = vsyncpa [#allocation3], 0  ;;  %v18_v8 = vld [vmem:[%s806_s1 + $0x20] sm:$0xff]  ;;  %v19_v9 = vld [vmem:[%s806_s1 + $0x28] sm:$0xff]  ;;  %v673_v21 = vmov 0.0   ;;  %vm674_vm2 = vmmov 0  }
   0x8   :  { %v610_v10 = vpack.c.bf16 %v19_v9, %v18_v8  ;;  %v20_v11 = vld [vmem:[%s806_s1 + $0x30] sm:$0xff]  ;;  %v21_v12 = vld [vmem:[%s806_s1 + $0x38] sm:$0xff]  ;;  %v22_v14 = vld [vmem:[%s806_s1 + $0x40] sm:$0xff]  ;;  %578 = vmatprep.subr.mxu1 %v673_v21  ;;  %580 = vmatprep.mubr.msk.f32.mxu1 %vm674_vm2, %v673_v21  ;;  %s676_s9 = smov 96   ;;  %vm300_vm3 = vcmask 64512  }
   0x9   :  { %v616_v13 = vpack.c.bf16 %v21_v12, %v20_v11  ;;  %v23_v15 = vld [vmem:[%s806_s1 + $0x48] sm:$0xff]  ;;  %v24_v17 = vld [vmem:[%s806_s1 + $0x50] sm:$0xff]  ;;  %v25_v18 = vld [vmem:[%s806_s1 + $0x58] sm:$0xff]  ;;  %s675_s1 = smov 64  }
   0xa   :  { %v622_v16 = vpack.c.bf16 %v23_v15, %v22_v14  ;;  %v628_v19 = vpack.c.bf16 %v25_v18, %v24_v17  ;;  %v13_v20 = vld [vmem:[%s805_s0 + $0x8] sm:$0xff]  ;;  %s677_s0 = smov [#allocation2]  }
   0xb   :  { %s498_s10 = sshll.u32 %s677_s0, 4  ;;  %s499_s10 = int_to_ptr.vmem [resolvable:$true] %s498_s10 }
   0xc   :  { %s649_s11 = scalar_lea.vmem %s499_s10, 256  ;;  %p654_p1 = scmp.lt.s32.totalorder %s499_s10, %s499_s10 }
   0xd   :  { %609 = vmatpush3.bf16.xpose.msk.msra.mxu0 %vm706_vm1, %v604_v6  ;;  %p650_p0 = scmp.ne.s32.totalorder %s499_s10, %s649_s11  ;;  %p655_p2 = scmp.lt.s32.totalorder %s649_s11, %s649_s11 }
   0xe   :  { %612 = vmatprep.subr.msk.bf16.mxu0 %vm706_vm1, %v610_v10 }
   0xf   :  { %p656_p3 = por %p655_p2, %p654_p1 }
  0x11   :  { %p657_p4 = pnand %p656_p3, %p650_p0 }
  0x15   :  { %615 = vmatpush3.bf16.xpose.msk.msra.mxu0 %vm706_vm1, %v610_v10 }
  0x16   :  { %618 = vmatprep.subr.msk.bf16.mxu0 %vm706_vm1, %v616_v13 }
  0x1d   :  { %621 = vmatpush3.bf16.xpose.msk.msra.mxu0 %vm706_vm1, %v616_v13 }
  0x1e   :  { %624 = vmatprep.subr.msk.bf16.mxu0 %vm706_vm1, %v622_v16 }
  0x25   :  { %627 = vmatpush3.bf16.xpose.msk.msra.mxu0 %vm706_vm1, %v622_v16 }
  0x26   :  { %630 = vmatprep.subr.msk.bf16.mxu0 %vm706_vm1, %v628_v19 }
  0x2d   :  { %633 = vmatpush3.bf16.xpose.msk.msra.mxu0 %vm706_vm1, %v628_v19 }
  0x34   :  { %576 = vmatmul.mubr.msk.f32.vlgmr.msra.gmra.mrb[0].mxu0 %vm26_vm0, %v13_v20 }
 0x107   :  { %v577_v22 = vpop.f32.mrb[0].mxu0 }
 0x108   :  { %v135_v23 = vpop.f32.mrb[1].mxu0 }
 0x109   :  { %339 = vrot.lane.b32.xlu1 %v135_v23, %s675_s1  ;;  %145 = vrot.lane.b32.xlu0 %v135_v23, %s676_s9 }
 0x10d   :  { %415 = vrot.lane.b32.xlu1 %v577_v22, %s675_s1  ;;  %222 = vrot.lane.b32.xlu0 %v577_v22, %s676_s9 }
 0x17b   :  { %v146_v24 = vpop.permute.xlu0 %145  ;;  %v340_v26 = vpop.permute.xlu1 %339 }
 0x17c   :  { %579 = vmatpush3.xpose.msk.msra.mxu1 %vm26_vm0, %v146_v24 }
 0x17d   :  { %583 = vmatprep.subr.mxu1 %v673_v21 }
 0x17f   :  { %581 = vmatmul.mubr.msk.f32.vlgmr.msra.gmra.mrb[0].mxu1 %vm26_vm0, %v135_v23  ;;  %v223_v25 = vpop.permute.xlu0 %222  ;;  %v416_v5 = vpop.permute.xlu1 %415 }
 0x180   :  { %584 = vmatpush3.xpose.msk.msra.mxu1 %vm26_vm0, %v223_v25  ;;  %585 = vmatprep.mubr.msk.f32.mxu1 %vm674_vm2, %v673_v21 }
 0x181   :  { %588 = vmatprep.subr.mxu1 %v673_v21 }
 0x183   :  { %586 = vmatmul.mubr.msk.f32.vlgmr.msra.gmra.mrb[2].mxu1 %vm26_vm0, %v577_v22 }
 0x184   :  { %589 = vmatpush3.msra.mxu1 %v340_v26  ;;  %590 = vmatprep.mubr.msk.f32.mxu1 %vm674_vm2, %v673_v21 }
 0x185   :  { %593 = vmatprep.subr.mxu1 %v673_v21 }
 0x252   :  { %v217_v27 = vpop.f32.mrb[0].mxu1 }
 0x253   :  { %v298_v28 = vmul.f32 0.17677669, %v217_v27  ;;  %v582_v29 = vpop.f32.mrb[1].mxu1 }
 0x255   :  { %v301_v30 = vsel %vm300_vm3, %v298_v28, -inf }
 0x256   :  { %v302_v31 = vrot.slane %v301_v30, 4  ;;  %v294_v32 = vpop.f32.mrb[2].mxu1 }
 0x257   :  { %v299_v33 = vmul.f32 0.17677669, %v294_v32  ;;  %v587_v34 = vpop.f32.mrb[3].mxu1 }
 0x258   :  { %v303_v35 = vmax.f32 %v301_v30, %v302_v31 }
 0x259   :  { %v308_v36 = vsel %vm300_vm3, %v299_v33, -inf }
 0x25a   :  { %v304_v37 = vrot.slane %v303_v35, 2  ;;  %v309_v38 = vrot.slane %v308_v36, 4 }
 0x25c   :  { %v305_v39 = vmax.f32 %v303_v35, %v304_v37  ;;  %v310_v40 = vmax.f32 %v308_v36, %v309_v38 }
 0x25e   :  { %v306_v41 = vrot.slane %v305_v39, 1  ;;  %v311_v42 = vrot.slane %v310_v40, 2 }
 0x260   :  { %v307_v43 = vmax.f32 %v305_v39, %v306_v41  ;;  %v312_v44 = vmax.f32 %v310_v40, %v311_v42 }
 0x262   :  { %v315_v45 = vsub.f32 %v298_v28, %v307_v43  ;;  %v313_v46 = vrot.slane %v312_v44, 1 }
 0x264   :  { %v317_v47 = vmul.f32 1.442695, %v315_v45  ;;  %v314_v48 = vmax.f32 %v312_v44, %v313_v46 }
 0x266   :  { %641 = vpow2.f32 %v317_v47  ;;  %v316_v49 = vsub.f32 %v299_v33, %v314_v48 }
 0x268   :  { %v319_v50 = vmul.f32 1.442695, %v316_v49 }
 0x26a   :  { %643 = vpow2.f32 %v319_v50 }
 0x270   :  { %v642_v51 = vpop.eup %641 }
 0x271   :  { %v321_v52 = vsel %vm300_vm3, %v642_v51, 0.0 }
 0x272   :  { %v322_v53 = vrot.slane %v321_v52, 4 }
 0x274   :  { %v644_v54 = vpop.eup %643  ;;  %v323_v55 = vadd.f32 %v322_v53, %v321_v52 }
 0x275   :  { %v328_v56 = vsel %vm300_vm3, %v644_v54, 0.0 }
 0x276   :  { %v324_v57 = vrot.slane %v323_v55, 2  ;;  %v329_v58 = vrot.slane %v328_v56, 4 }
 0x278   :  { %v325_v59 = vadd.f32 %v324_v57, %v323_v55  ;;  %v330_v60 = vadd.f32 %v329_v58, %v328_v56 }
 0x27a   :  { %v326_v61 = vrot.slane %v325_v59, 1  ;;  %v331_v62 = vrot.slane %v330_v60, 2 }
 0x27c   :  { %v327_v63 = vadd.f32 %v326_v61, %v325_v59  ;;  %v332_v0 = vadd.f32 %v331_v62, %v330_v60 }
 0x27e   :  { %645 = vrcp.f32 %v327_v63  ;;  %v333_v1 = vrot.slane %v332_v0, 1 }
 0x280   :  { %v334_v2 = vadd.f32 %v333_v1, %v332_v0 }
 0x282   :  { %647 = vrcp.f32 %v334_v2 }
 0x288   :  { %v646_v3 = vpop.eup %645 }
 0x289   :  { %v336_v4 = vmul.f32 %v646_v3, %v642_v51 }
 0x28b   :  { %591 = vmatmul.mubr.msk.f32.vlgmr.msra.gmra.mrb[4].mxu1 %vm300_vm3, %v336_v4 }
 0x28c   :  { %v648_v6 = vpop.eup %647  ;;  %594 = vmatpush3.msra.mxu1 %v416_v5  ;;  %595 = vmatprep.mubr.msk.f32.mxu1 %vm674_vm2, %v673_v21 }
 0x28d   :  { %v338_v7 = vmul.f32 %v648_v6, %v644_v54 }
 0x28f   :  { %596 = vmatmul.mubr.msk.f32.vlgmr.msra.gmra.mrb[6].mxu1 %vm300_vm3, %v338_v7 }
 0x35e   :  { %v411_v8 = vpop.f32.mrb[4].mxu1 }
 0x35f   :  { %491 = vst.msk [vmem:[#allocation2] sm:$0xff] %vm26_vm0, %v411_v8  ;;  %v592_v9 = vpop.f32.mrb[5].mxu1 }
 0x362   :  { %v487_v10 = vpop.f32.mrb[6].mxu1 }
 0x363   :  { %492 = vst.msk [vmem:[#allocation2 + $0x8] sm:$0xff] %vm26_vm0, %v487_v10  ;;  %v597_v11 = vpop.f32.mrb[7].mxu1 }
 0x364   :  { %660 = shalt.err (!%p657_p4)
}
 0x365   :  { %s661_s14 = scalar_lea.hbm %s807_s2, 256 }
 0x366   :  { %p662_p5 = scmp.ne.s32.totalorder %s807_s2, %s661_s14  ;;  %p665_p6 = scmp.lt.u32.totalorder %s661_s14, %s807_s2 }
 0x368   :  { %p667_p7 = pnand %p665_p6, %p662_p5 }
 0x36a   :  { %670 = shalt.err (!%p667_p7)
}
 0x36b   :  { %s678_s19 = smov 128   ;;  %s679_s20 = smov 8  }
 0x36c   :  { %504 = dma.vmem_to_hbm [thread:$0]  %s499_s10, 256, %s807_s2, [#allocation3], %s678_s19, %s678_s19, %s679_s20  }
 0x36d   :  { %671 = dma.done.wait [#allocation3], 256  }
 0x36e   :  { %672 = vsyncadd [#allocation3], 4294967040 }
 0x36f   :  { %508 = vsyncpa [#allocation3], 1 }

</bundles_post_ra>
